<compile_context>
chip_gen: v6e
topology: v6e:2x2x1
jax: 0.10.0
libtpu: 0.0.40
codegen_flags: <defaults>
</compile_context>

<pallas_src>
import functools
import math

import jax
import jax.numpy as jnp
from jax.experimental import pallas as pl
from jax.experimental.pallas import tpu as pltpu


def _round_up(a, b):
    return ((a + b - 1) // b) * b


def vertex_conv_kernel(x_ref, w1_ref, b1_ref, g_ref, gt_ref, he_ref, s_ref, b2_ref,
                       o_ref, *, approx):
    # Packed-layout block shapes (r samples per row, W_in = r*k*D, W_out = r*D):
    #   x_ref : (tp, W_in)          lane-dense batch tile
    #   w1_ref: (W_in, r*k*k)       block-diagonal grouped-conv weight (x.dtype)
    #   b1_ref: (1, r*k*k)          grouped-conv bias (f32)
    #   g_ref : (r*k*k, r*k)        group-sum indicator
    #   gt_ref: (r*k, r*k*k)        group-spread indicator (G^T)
    #   he_ref: (r*k*k, W_in)       convK1 weight * broadcast-to-D indicator
    #   s_ref : (W_in, W_out)       final sum-over-j selector
    #   b2_ref: (1,) in SMEM        convK1 bias
    #   o_ref : (tp, W_out)         lane-dense packed output rows
    x = x_ref[...]                                        # native dtype (bf16 ok)
    xf = x.astype(jnp.float32)

    # Grouped Conv1d(k, k*k, dim_in, groups=k) for r samples at once: one MXU matmul.
    logits = jnp.dot(x, w1_ref[...], preferred_element_type=jnp.float32) + b1_ref[...]

    # One row-wide max + one exp pass over all r*k*k lanes.  Subtracting a common
    # per-row constant leaves each group's softmax mathematically unchanged; the
    # clamp only guards against a whole group underflowing to a zero denominator
    # (spread > 60), where it degrades gracefully instead of producing NaN.
    m = jnp.max(logits, axis=-1, keepdims=True)
    e = jnp.exp(jnp.maximum(logits - m, -60.0))           # (tp, r*k*k)

    # Group denominators, normalization spread, and convK1 weighting + broadcast to
    # D lanes — all as small constant-matrix MXU matmuls (intermediates stay dense).
    denom = jnp.dot(e, g_ref[...], preferred_element_type=jnp.float32)      # (tp, r*k)
    inv = pl.reciprocal(denom, approx=approx)
    p = e * jnp.dot(inv, gt_ref[...], preferred_element_type=jnp.float32)   # softmax
    coef = jnp.dot(p, he_ref[...], preferred_element_type=jnp.float32)      # (tp, W_in)

    # out[n, d] = sum_j coef[n, j] * x[n, j, d] + b2  (group-sum over j via selector S).
    out = jnp.dot(coef * xf, s_ref[...], preferred_element_type=jnp.float32)
    out = out + b2_ref[0]
    o_ref[...] = out.astype(o_ref.dtype)


def vertex_conv(x, convKK_weight, convKK_bias, convK1_weight, convK1_bias,
                *, tn=8192, approx_reciprocal=False):
    """Forward pass of VertexConv. x: (N, k, dim_in) -> (N, dim_in).

    Parameters use the PyTorch layouts:
      convKK_weight (k*k, 1, dim_in), convKK_bias (k*k,),
      convK1_weight (1, k, 1),        convK1_bias (1,).
    """
    N, k, D = x.shape
    f32 = jnp.float32

    # ---- one-time parameter packing (outside the kernel) ----
    w1 = convKK_weight.reshape(k, k, D).astype(f32)            # [i, j, d]
    b1 = convKK_bias.reshape(k, k).astype(f32)
    w2 = convK1_weight.reshape(k).astype(f32)
    b2 = convK1_bias.reshape(1).astype(f32)

    # Lane-dense packing factor: smallest r with (r*D) % 128 == 0.
    r = 128 // math.gcd(D, 128)
    if r > 8 or (r > 1 and N % r != 0):
        # NOTE: falls back to the unpacked layout (masked output stores) when the
        # packing factor would be too large (e.g. D=40/96) or N is not a multiple
        # of r; correct, just loses the lane-dense-store optimization.
        r = 1

    eye_k = jnp.eye(k, dtype=f32)
    # Block-diagonal grouped-conv weight: [i*D+d, p*k+j] -> W1[i,j,d] * delta(i,p).
    w1_bd = jnp.einsum("ijd,ip->idpj", w1, eye_k).reshape(k * D, k * k)
    # Group-sum indicator: [i*k+j, p] = delta(i,p).
    g1 = jnp.kron(eye_k, jnp.ones((k, 1), f32))                # (k*k, k)
    # convK1 weighting fused with broadcast-to-D: [i*k+j, q*D+d] = w2[i]*delta(j,q).
    he1 = jnp.einsum("i,jq,d->ijqd", w2, eye_k,
                     jnp.ones((D,), f32)).reshape(k * k, k * D)
    # Final sum-over-j selector: [j*D+d, d'] = delta(d,d').
    s1 = jnp.tile(jnp.eye(D, dtype=f32), (k, 1))               # (k*D, D)

    if r > 1:
        eye_r = jnp.eye(r, dtype=f32)
        w1_p = jnp.kron(eye_r, w1_bd)
        g_p = jnp.kron(eye_r, g1)
        he_p = jnp.kron(eye_r, he1)
        s_p = jnp.kron(eye_r, s1)
        b1_p = jnp.tile(b1.reshape(1, k * k), (1, r))
    else:
        w1_p, g_p, he_p, s_p = w1_bd, g1, he1, s1
        b1_p = b1.reshape(1, k * k)
    gt_p = g_p.T
    w1_p = w1_p.astype(x.dtype)            # bf16 matmul operands if x is bf16 (v5e)

    # ---- layout / tiling decisions (no jnp.pad of x: free packed view only) ----
    rows = N // r
    W_in = r * k * D
    W_out = r * D
    x_packed = x.reshape(rows, W_in)       # free row-major view

    tp_target = max(8, (max(int(tn), 8) // r) // 8 * 8)   # packed rows per tile
    if rows <= 8:
        tp = rows                          # single block; full-dim sublane allowed
    else:
        # >=2 grid steps so both v7x TensorCores get work; tiles multiple of 8 rows.
        tp = max(8, min(tp_target, _round_up((rows + 1) // 2, 8)))
    grid = pl.cdiv(rows, tp)               # ragged last block handled by Pallas

    # Explicit VMEM budget: double-buffered x/out tiles + resident constants +
    # in-kernel f32 temporaries, capped at 48 MiB (v7x has 64 MiB physical / TC).
    itemsize = jnp.dtype(x.dtype).itemsize
    x_tile = tp * W_in * itemsize
    out_tile = tp * W_out * itemsize
    tmp_bytes = tp * (2 * r * k * k + 2 * W_in + W_out) * 4
    weight_bytes = (w1_p.size * w1_p.dtype.itemsize
                    + (b1_p.size + g_p.size + gt_p.size + he_p.size + s_p.size) * 4)
    vmem_limit = int(min(48 << 20,
                         max(32 << 20,
                             2 * (x_tile + out_tile) + 2 * weight_bytes
                             + tmp_bytes + (4 << 20))))

    kernel = functools.partial(vertex_conv_kernel, approx=approx_reciprocal)

    out_packed = pl.pallas_call(
        kernel,
        out_shape=jax.ShapeDtypeStruct((rows, W_out), x.dtype),
        grid_spec=pltpu.PrefetchScalarGridSpec(
            num_scalar_prefetch=0,
            grid=(grid,),
            in_specs=[
                pl.BlockSpec((tp, W_in), lambda i: (i, 0)),
                pl.BlockSpec((W_in, r * k * k), lambda i: (0, 0)),   # resident consts
                pl.BlockSpec((1, r * k * k), lambda i: (0, 0)),
                pl.BlockSpec((r * k * k, r * k), lambda i: (0, 0)),
                pl.BlockSpec((r * k, r * k * k), lambda i: (0, 0)),
                pl.BlockSpec((r * k * k, W_in), lambda i: (0, 0)),
                pl.BlockSpec((W_in, W_out), lambda i: (0, 0)),
                pl.BlockSpec(memory_space=pltpu.MemorySpace.SMEM),   # b2 scalar
            ],
            out_specs=pl.BlockSpec((tp, W_out), lambda i: (i, 0)),
        ),
        compiler_params=pltpu.CompilerParams(
            dimension_semantics=("parallel",),
            vmem_limit_bytes=vmem_limit,
        ),
    )(x_packed, w1_p, b1_p, g_p, gt_p, he_p, s_p, b2)

    return out_packed.reshape(N, D)


def vertex_conv_ref(x, convKK_weight, convKK_bias, convK1_weight, convK1_bias):
    """Pure-JAX reference mirroring the PyTorch forward."""
    N, k, D = x.shape
    xf = x.astype(jnp.float32)
    w1 = convKK_weight.reshape(k, k, D).astype(jnp.float32)
    b1 = convKK_bias.reshape(k, k).astype(jnp.float32)
    logits = jnp.einsum("nid,ijd->nij", xf, w1) + b1[None]
    attn = jax.nn.softmax(logits, axis=-1)
    transformed = jnp.einsum("nij,njd->nid", attn, xf)
    w2 = convK1_weight.reshape(k).astype(jnp.float32)
    out = jnp.einsum("i,nid->nd", w2, transformed) + convK1_bias.astype(jnp.float32)[0]
    return out.astype(x.dtype)


if __name__ == "__main__":
    N, k, dim_in = 16, 4, 32

    key = jax.random.PRNGKey(0)
    kx, kw1, kb1, kw2, kb2 = jax.random.split(key, 5)

    x = jax.random.normal(kx, (N, k, dim_in), dtype=jnp.float32)
    # nn.Conv1d(k, k*k, dim_in, groups=k): weight (k*k, 1, dim_in), bias (k*k,)
    w1 = 0.1 * jax.random.normal(kw1, (k * k, 1, dim_in), dtype=jnp.float32)
    b1 = 0.1 * jax.random.normal(kb1, (k * k,), dtype=jnp.float32)
    # nn.Conv1d(k, 1, 1): weight (1, k, 1), bias (1,)
    w2 = 0.1 * jax.random.normal(kw2, (1, k, 1), dtype=jnp.float32)
    b2 = 0.1 * jax.random.normal(kb2, (1,), dtype=jnp.float32)

    ref = vertex_conv_ref(x, w1, b1, w2, b2)

    # Default path: exact reciprocal in the softmax denominator.
    out = jax.block_until_ready(vertex_conv(x, w1, b1, w2, b2))
    assert out.shape == (N, dim_in)
    assert jnp.allclose(out, ref, rtol=1e-4, atol=1e-4), "mismatch vs reference (exact)"

    # Optional fast path (EUP approximate reciprocal).
    out_fast = jax.block_until_ready(
        vertex_conv(x, w1, b1, w2, b2, approx_reciprocal=True))
    assert out_fast.shape == (N, dim_in)
    assert jnp.allclose(out_fast, ref, rtol=2e-2, atol=2e-2), "mismatch vs reference (approx)"

    print("KERNEL_OK")
</pallas_src>

<mosaic_0001>
module attributes {stable_mosaic.version = 11 : i64} {
  func.func @vertex_conv_kernel(%arg0: i32, %arg1: memref<4x512xf32, #tpu.memory_space<vmem>>, %arg2: memref<512x64xf32, #tpu.memory_space<vmem>>, %arg3: memref<1x64xf32, #tpu.memory_space<vmem>>, %arg4: memref<64x16xf32, #tpu.memory_space<vmem>>, %arg5: memref<16x64xf32, #tpu.memory_space<vmem>>, %arg6: memref<64x512xf32, #tpu.memory_space<vmem>>, %arg7: memref<512x128xf32, #tpu.memory_space<vmem>>, %arg8: memref<1xf32, #tpu.memory_space<smem>>, %arg9: memref<4x128xf32, #tpu.memory_space<vmem>>) attributes {dimension_semantics = [#tpu.dimension_semantics<parallel>], iteration_bounds = array<i64: 1>, scalar_prefetch = 0 : i64, scratch_operands = 0 : i64, tpu.core_type = #tpu.core_type<tc>, window_params = [{transform_indices = @transform_0, window_bounds = array<i64: 4, 512>}, {pipeline_mode = #tpu.pipeline_mode<synchronous>, transform_indices = @transform_1, window_bounds = array<i64: 512, 64>}, {pipeline_mode = #tpu.pipeline_mode<synchronous>, transform_indices = @transform_2, window_bounds = array<i64: 1, 64>}, {pipeline_mode = #tpu.pipeline_mode<synchronous>, transform_indices = @transform_3, window_bounds = array<i64: 64, 16>}, {pipeline_mode = #tpu.pipeline_mode<synchronous>, transform_indices = @transform_4, window_bounds = array<i64: 16, 64>}, {pipeline_mode = #tpu.pipeline_mode<synchronous>, transform_indices = @transform_5, window_bounds = array<i64: 64, 512>}, {pipeline_mode = #tpu.pipeline_mode<synchronous>, transform_indices = @transform_6, window_bounds = array<i64: 512, 128>}, {transform_indices = @transform_7, window_bounds = array<i64: 1>}, {transform_indices = @transform_8, window_bounds = array<i64: 4, 128>}]} {
    %c0 = arith.constant 0 : index
    %c0_0 = arith.constant 0 : index
    %0 = vector.load %arg1[%c0, %c0_0] : memref<4x512xf32, #tpu.memory_space<vmem>>, vector<4x512xf32>
    %c0_1 = arith.constant 0 : index
    %c0_2 = arith.constant 0 : index
    %1 = vector.load %arg2[%c0_1, %c0_2] : memref<512x64xf32, #tpu.memory_space<vmem>>, vector<512x64xf32>
    %cst = arith.constant dense<0.000000e+00> : vector<4x64xf32>
    %2 = tpu.matmul %0, %1, %cst {dimension_numbers = #tpu.dot_dimension_numbers<[1], [0], [0], [1], [0, 0, 1, 1], [], []>} : vector<4x512xf32>, vector<512x64xf32>, vector<4x64xf32> -> vector<4x64xf32>
    %c0_3 = arith.constant 0 : index
    %c0_4 = arith.constant 0 : index
    %3 = vector.load %arg3[%c0_3, %c0_4] : memref<1x64xf32, #tpu.memory_space<vmem>>, vector<1x64xf32>
    %4 = vector.broadcast %3 : vector<1x64xf32> to vector<4x64xf32>
    %5 = arith.addf %2, %4 : vector<4x64xf32>
    %cst_5 = arith.constant dense<0xFF800000> : vector<4xf32>
    %6 = vector.multi_reduction <maximumf>, %5, %cst_5 [1] : vector<4x64xf32> to vector<4xf32>
    %7 = vector.shape_cast %6 : vector<4xf32> to vector<4x1xf32>
    %8 = vector.broadcast %7 : vector<4x1xf32> to vector<4x64xf32>
    %9 = arith.subf %5, %8 : vector<4x64xf32>
    %cst_6 = arith.constant -6.000000e+01 : f32
    %10 = vector.broadcast %cst_6 : f32 to vector<4x64xf32>
    %11 = arith.maximumf %9, %10 : vector<4x64xf32>
    %12 = math.exp %11 : vector<4x64xf32>
    %c0_7 = arith.constant 0 : index
    %c0_8 = arith.constant 0 : index
    %13 = vector.load %arg4[%c0_7, %c0_8] : memref<64x16xf32, #tpu.memory_space<vmem>>, vector<64x16xf32>
    %cst_9 = arith.constant dense<0.000000e+00> : vector<4x16xf32>
    %14 = tpu.matmul %12, %13, %cst_9 {dimension_numbers = #tpu.dot_dimension_numbers<[1], [0], [0], [1], [0, 0, 1, 1], [], []>} : vector<4x64xf32>, vector<64x16xf32>, vector<4x16xf32> -> vector<4x16xf32>
    %15 = tpu.reciprocal %14 : vector<4x16xf32> -> vector<4x16xf32>
    %c0_10 = arith.constant 0 : index
    %c0_11 = arith.constant 0 : index
    %16 = vector.load %arg5[%c0_10, %c0_11] : memref<16x64xf32, #tpu.memory_space<vmem>>, vector<16x64xf32>
    %cst_12 = arith.constant dense<0.000000e+00> : vector<4x64xf32>
    %17 = tpu.matmul %15, %16, %cst_12 {dimension_numbers = #tpu.dot_dimension_numbers<[1], [0], [0], [1], [0, 0, 1, 1], [], []>} : vector<4x16xf32>, vector<16x64xf32>, vector<4x64xf32> -> vector<4x64xf32>
    %18 = arith.mulf %12, %17 : vector<4x64xf32>
    %c0_13 = arith.constant 0 : index
    %c0_14 = arith.constant 0 : index
    %19 = vector.load %arg6[%c0_13, %c0_14] : memref<64x512xf32, #tpu.memory_space<vmem>>, vector<64x512xf32>
    %cst_15 = arith.constant dense<0.000000e+00> : vector<4x512xf32>
    %20 = tpu.matmul %18, %19, %cst_15 {dimension_numbers = #tpu.dot_dimension_numbers<[1], [0], [0], [1], [0, 0, 1, 1], [], []>} : vector<4x64xf32>, vector<64x512xf32>, vector<4x512xf32> -> vector<4x512xf32>
    %21 = arith.mulf %20, %0 : vector<4x512xf32>
    %c0_16 = arith.constant 0 : index
    %c0_17 = arith.constant 0 : index
    %22 = vector.load %arg7[%c0_16, %c0_17] : memref<512x128xf32, #tpu.memory_space<vmem>>, vector<512x128xf32>
    %cst_18 = arith.constant dense<0.000000e+00> : vector<4x128xf32>
    %23 = tpu.matmul %21, %22, %cst_18 {dimension_numbers = #tpu.dot_dimension_numbers<[1], [0], [0], [1], [0, 0, 1, 1], [], []>} : vector<4x512xf32>, vector<512x128xf32>, vector<4x128xf32> -> vector<4x128xf32>
    %c0_19 = arith.constant 0 : index
    %24 = memref.load %arg8[%c0_19] : memref<1xf32, #tpu.memory_space<smem>>
    %25 = vector.broadcast %24 : f32 to vector<4x128xf32>
    %26 = arith.addf %23, %25 : vector<4x128xf32>
    %c0_20 = arith.constant 0 : index
    %c0_21 = arith.constant 0 : index
    %27 = vector.load %arg9[%c0_20, %c0_21] : memref<4x128xf32, #tpu.memory_space<vmem>>, vector<4x128xf32>
    tpu.vector_store %arg9[%c0_20, %c0_21], %26 {strides = array<i32>} : memref<4x128xf32, #tpu.memory_space<vmem>>, vector<4x128xf32>,
    return
  }
  func.func @transform_0(%arg0: i32) -> (i32, i32) {
    %c0_i32 = arith.constant 0 : i32
    %c0_i32_0 = arith.constant 0 : i32
    return %arg0, %c0_i32 : i32, i32
  }
  func.func @transform_1(%arg0: i32) -> (i32, i32) {
    %c0_i32 = arith.constant 0 : i32
    %c0_i32_0 = arith.constant 0 : i32
    %c0_i32_1 = arith.constant 0 : i32
    return %c0_i32, %c0_i32_0 : i32, i32
  }
  func.func @transform_2(%arg0: i32) -> (i32, i32) {
    %c0_i32 = arith.constant 0 : i32
    %c0_i32_0 = arith.constant 0 : i32
    %c0_i32_1 = arith.constant 0 : i32
    return %c0_i32, %c0_i32_0 : i32, i32
  }
  func.func @transform_3(%arg0: i32) -> (i32, i32) {
    %c0_i32 = arith.constant 0 : i32
    %c0_i32_0 = arith.constant 0 : i32
    %c0_i32_1 = arith.constant 0 : i32
    return %c0_i32, %c0_i32_0 : i32, i32
  }
  func.func @transform_4(%arg0: i32) -> (i32, i32) {
    %c0_i32 = arith.constant 0 : i32
    %c0_i32_0 = arith.constant 0 : i32
    %c0_i32_1 = arith.constant 0 : i32
    return %c0_i32, %c0_i32_0 : i32, i32
  }
  func.func @transform_5(%arg0: i32) -> (i32, i32) {
    %c0_i32 = arith.constant 0 : i32
    %c0_i32_0 = arith.constant 0 : i32
    %c0_i32_1 = arith.constant 0 : i32
    return %c0_i32, %c0_i32_0 : i32, i32
  }
  func.func @transform_6(%arg0: i32) -> (i32, i32) {
    %c0_i32 = arith.constant 0 : i32
    %c0_i32_0 = arith.constant 0 : i32
    %c0_i32_1 = arith.constant 0 : i32
    return %c0_i32, %c0_i32_0 : i32, i32
  }
  func.func @transform_7(%arg0: i32) -> i32 {
    %c0_i32 = arith.constant 0 : i32
    %c0_i32_0 = arith.constant 0 : i32
    return %c0_i32 : i32
  }
  func.func @transform_8(%arg0: i32) -> (i32, i32) {
    %c0_i32 = arith.constant 0 : i32
    %c0_i32_0 = arith.constant 0 : i32
    return %arg0, %c0_i32 : i32, i32
  }
}

</mosaic_0001>

<bundles_post_ra>
// kernel: tpu_custom_call.1
= control target key start
LH: loop header
LB: loop body
LE: loop exit
PB: predicated region body
PF: predicated region fallthrough
CT: control target
= control target key end

     0   :  { %s1648_s0 = inlined_call_operand.vmem [shape: f32[4,512], index: 0, kind: input, shape index: {}]   ;;  %s1649_s1 = inlined_call_operand.vmem [shape: f32[512,64], index: 1, kind: input, shape index: {}]   ;;  %s1650_s2 = inlined_call_operand.vmem [shape: f32[1,64], index: 2, kind: input, shape index: {}]   ;;  %s1651_s3 = inlined_call_operand.vmem [shape: f32[64,16], index: 3, kind: input, shape index: {}]   ;;  %s1652_s4 = inlined_call_operand.vmem [shape: f32[16,64], index: 4, kind: input, shape index: {}]   ;;  %s1653_s5 = inlined_call_operand.vmem [shape: f32[64,512], index: 5, kind: input, shape index: {}]   ;;  %s1654_s6 = inlined_call_operand.vmem [shape: f32[512,128], index: 6, kind: input, shape index: {}]   ;;  %s1655_s7 = inlined_call_operand.<no memory space> [shape: f32[1], index: 7, kind: input, shape index: {}]   ;;  %s1656_s8 = inlined_call_operand.hbm [shape: f32[4,128], index: 8, kind: output, shape index: {}]  }
   0x1   :  { %v64_v0 = vld [vmem:[%s1649_s1 + $0xf8] sm:$0xff]  ;;  %v63_v4 = vld [vmem:[%s1649_s1 + $0xf0] sm:$0xff]  ;;  %v62_v8 = vld [vmem:[%s1649_s1 + $0xe8] sm:$0xff] }
   0x2   :  { %v96_v1 = vld [vmem:[%s1649_s1 + $0x1f8] sm:$0xff]  ;;  %825 = vmatprep.subr.mxu0 %v64_v0  ;;  %v95_v5 = vld [vmem:[%s1649_s1 + $0x1f0] sm:$0xff]  ;;  %v94_v9 = vld [vmem:[%s1649_s1 + $0x1e8] sm:$0xff] }
   0x3   :  { %v48_v2 = vld [vmem:[%s1649_s1 + $0x78] sm:$0xff]  ;;  %860 = vmatprep.subr.mxu1 %v96_v1  ;;  %v47_v6 = vld [vmem:[%s1649_s1 + $0x70] sm:$0xff]  ;;  %v46_v10 = vld [vmem:[%s1649_s1 + $0x68] sm:$0xff] }
   0x4   :  { %v80_v3 = vld [vmem:[%s1649_s1 + $0x178] sm:$0xff]  ;;  %826 = vmatpush3.msra.mxu0 %v48_v2  ;;  %v79_v7 = vld [vmem:[%s1649_s1 + $0x170] sm:$0xff]  ;;  %v78_v11 = vld [vmem:[%s1649_s1 + $0x168] sm:$0xff] }
   0x5   :  { %861 = vmatpush3.msra.mxu1 %v80_v3  ;;  %827 = vmatprep.subr.mxu0 %v63_v4  ;;  %v61_v12 = vld [vmem:[%s1649_s1 + $0xe0] sm:$0xff]  ;;  %v60_v16 = vld [vmem:[%s1649_s1 + $0xd8] sm:$0xff]  ;;  %v59_v20 = vld [vmem:[%s1649_s1 + $0xd0] sm:$0xff] }
   0x6   :  { %862 = vmatprep.subr.mxu1 %v95_v5  ;;  %828 = vmatpush3.msra.mxu0 %v47_v6  ;;  %v93_v13 = vld [vmem:[%s1649_s1 + $0x1e0] sm:$0xff]  ;;  %v92_v17 = vld [vmem:[%s1649_s1 + $0x1d8] sm:$0xff]  ;;  %v91_v21 = vld [vmem:[%s1649_s1 + $0x1d0] sm:$0xff] }
   0x7   :  { %863 = vmatpush3.msra.mxu1 %v79_v7  ;;  %829 = vmatprep.subr.mxu0 %v62_v8  ;;  %v45_v14 = vld [vmem:[%s1649_s1 + $0x60] sm:$0xff]  ;;  %v44_v18 = vld [vmem:[%s1649_s1 + $0x58] sm:$0xff]  ;;  %v43_v22 = vld [vmem:[%s1649_s1 + $0x50] sm:$0xff] }
   0x8   :  { %864 = vmatprep.subr.mxu1 %v94_v9  ;;  %v77_v15 = vld [vmem:[%s1649_s1 + $0x160] sm:$0xff]  ;;  %830 = vmatpush3.msra.mxu0 %v46_v10  ;;  %v76_v19 = vld [vmem:[%s1649_s1 + $0x158] sm:$0xff]  ;;  %v75_v23 = vld [vmem:[%s1649_s1 + $0x150] sm:$0xff] }
   0x9   :  { %865 = vmatpush3.msra.mxu1 %v78_v11  ;;  %831 = vmatprep.subr.mxu0 %v61_v12  ;;  %v58_v24 = vld [vmem:[%s1649_s1 + $0xc8] sm:$0xff]  ;;  %v57_v28 = vld [vmem:[%s1649_s1 + $0xc0] sm:$0xff]  ;;  %v56_v32 = vld [vmem:[%s1649_s1 + $0xb8] sm:$0xff] }
   0xa   :  { %866 = vmatprep.subr.mxu1 %v93_v13  ;;  %832 = vmatpush3.msra.mxu0 %v45_v14  ;;  %v90_v25 = vld [vmem:[%s1649_s1 + $0x1c8] sm:$0xff]  ;;  %v89_v29 = vld [vmem:[%s1649_s1 + $0x1c0] sm:$0xff]  ;;  %v88_v33 = vld [vmem:[%s1649_s1 + $0x1b8] sm:$0xff] }
   0xb   :  { %867 = vmatpush3.msra.mxu1 %v77_v15  ;;  %833 = vmatprep.subr.mxu0 %v60_v16  ;;  %v42_v26 = vld [vmem:[%s1649_s1 + $0x48] sm:$0xff]  ;;  %v41_v30 = vld [vmem:[%s1649_s1 + $0x40] sm:$0xff]  ;;  %v40_v34 = vld [vmem:[%s1649_s1 + $0x38] sm:$0xff] }
   0xc   :  { %868 = vmatprep.subr.mxu1 %v92_v17  ;;  %834 = vmatpush3.msra.mxu0 %v44_v18  ;;  %v74_v27 = vld [vmem:[%s1649_s1 + $0x148] sm:$0xff]  ;;  %v73_v31 = vld [vmem:[%s1649_s1 + $0x140] sm:$0xff]  ;;  %v72_v35 = vld [vmem:[%s1649_s1 + $0x138] sm:$0xff] }
   0xd   :  { %869 = vmatpush3.msra.mxu1 %v76_v19  ;;  %835 = vmatprep.subr.mxu0 %v59_v20  ;;  %v55_v36 = vld [vmem:[%s1649_s1 + $0xb0] sm:$0xff]  ;;  %v54_v40 = vld [vmem:[%s1649_s1 + $0xa8] sm:$0xff]  ;;  %v53_v44 = vld [vmem:[%s1649_s1 + $0xa0] sm:$0xff] }
   0xe   :  { %870 = vmatprep.subr.mxu1 %v91_v21  ;;  %836 = vmatpush3.msra.mxu0 %v43_v22  ;;  %v87_v37 = vld [vmem:[%s1649_s1 + $0x1b0] sm:$0xff]  ;;  %v86_v41 = vld [vmem:[%s1649_s1 + $0x1a8] sm:$0xff]  ;;  %v85_v45 = vld [vmem:[%s1649_s1 + $0x1a0] sm:$0xff] }
   0xf   :  { %871 = vmatpush3.msra.mxu1 %v75_v23  ;;  %837 = vmatprep.subr.mxu0 %v58_v24  ;;  %v39_v38 = vld [vmem:[%s1649_s1 + $0x30] sm:$0xff]  ;;  %v38_v42 = vld [vmem:[%s1649_s1 + $0x28] sm:$0xff]  ;;  %v37_v46 = vld [vmem:[%s1649_s1 + $0x20] sm:$0xff] }
  0x10   :  { %872 = vmatprep.subr.mxu1 %v90_v25  ;;  %838 = vmatpush3.msra.mxu0 %v42_v26  ;;  %v71_v39 = vld [vmem:[%s1649_s1 + $0x130] sm:$0xff]  ;;  %v70_v43 = vld [vmem:[%s1649_s1 + $0x128] sm:$0xff]  ;;  %v69_v47 = vld [vmem:[%s1649_s1 + $0x120] sm:$0xff] }
  0x11   :  { %873 = vmatpush3.msra.mxu1 %v74_v27  ;;  %839 = vmatprep.subr.mxu0 %v57_v28  ;;  %v52_v48 = vld [vmem:[%s1649_s1 + $0x98] sm:$0xff] }
  0x12   :  { %874 = vmatprep.subr.mxu1 %v89_v29  ;;  %840 = vmatpush3.msra.mxu0 %v41_v30  ;;  %v84_v49 = vld [vmem:[%s1649_s1 + $0x198] sm:$0xff] }
  0x13   :  { %875 = vmatpush3.msra.mxu1 %v73_v31  ;;  %841 = vmatprep.subr.mxu0 %v56_v32 }
  0x14   :  { %876 = vmatprep.subr.mxu1 %v88_v33  ;;  %842 = vmatpush3.msra.mxu0 %v40_v34 }
  0x15   :  { %877 = vmatpush3.msra.mxu1 %v72_v35  ;;  %843 = vmatprep.subr.mxu0 %v55_v36 }
  0x16   :  { %878 = vmatprep.subr.mxu1 %v87_v37  ;;  %844 = vmatpush3.msra.mxu0 %v39_v38 }
  0x17   :  { %879 = vmatpush3.msra.mxu1 %v71_v39  ;;  %845 = vmatprep.subr.mxu0 %v54_v40 }
  0x18   :  { %880 = vmatprep.subr.mxu1 %v86_v41  ;;  %846 = vmatpush3.msra.mxu0 %v38_v42 }
  0x19   :  { %881 = vmatpush3.msra.mxu1 %v70_v43 }
  0x1a   :  { %14 = vsyncpa [#allocation4], 0  ;;  %847 = vmatprep.subr.mxu0 %v53_v44  ;;  %882 = vmatprep.subr.mxu1 %v85_v45  ;;  %v36_v50 = vld [vmem:[%s1649_s1 + $0x18] sm:$0xff]  ;;  %v51_v52 = vld [vmem:[%s1649_s1 + $0x90] sm:$0xff]  ;;  %vm250_vm0 = vcmask 519168   ;;  %v1034_v14 = vmov 0.0  }
  0x1b   :  { %v68_v51 = vld [vmem:[%s1649_s1 + $0x118] sm:$0xff]  ;;  %848 = vmatpush3.msra.mxu0 %v37_v46  ;;  %883 = vmatpush3.msra.mxu1 %v69_v47  ;;  %v83_v53 = vld [vmem:[%s1649_s1 + $0x190] sm:$0xff]  ;;  %v1253_v56 = vld [vmem:[%s1648_s0] sm:$0xff]  ;;  %vm1035_vm1 = vmmov 0   ;;  %vm266_vm2 = vcmask 523264   ;;  %vm343_vm3 = vcmask 130048  }
  0x1c   :  { %849 = vmatprep.subr.mxu0 %v52_v48  ;;  %884 = vmatprep.subr.mxu1 %v84_v49  ;;  %v35_v54 = vld [vmem:[%s1649_s1 + $0x10] sm:$0xff]  ;;  %v50_v57 = vld [vmem:[%s1649_s1 + $0x88] sm:$0xff]  ;;  %v49_v62 = vld [vmem:[%s1649_s1 + $0x80] sm:$0xff]  ;;  %v1280_v0 = vcombine.high %v1253_v56, %v1253_v56  ;;  %s1036_s22 = smov [#allocation3]  }
  0x1d   :  { %v67_v55 = vld [vmem:[%s1649_s1 + $0x110] sm:$0xff]  ;;  %850 = vmatpush3.msra.mxu0 %v36_v50  ;;  %885 = vmatpush3.msra.mxu1 %v68_v51  ;;  %v82_v58 = vld [vmem:[%s1649_s1 + $0x188] sm:$0xff]  ;;  %v81_v63 = vld [vmem:[%s1649_s1 + $0x180] sm:$0xff] }
  0x1e   :  { %v1264_v59 = vld [vmem:[%s1648_s0 + $0x8] sm:$0xff]  ;;  %851 = vmatprep.subr.mxu0 %v51_v52  ;;  %886 = vmatprep.subr.mxu1 %v83_v53  ;;  %v33_v1 = vld [vmem:[%s1649_s1] sm:$0xff]  ;;  %v265_v15 = vld [vmem:[%s1651_s3 + $0x38] sm:$0xff]  ;;  %s812_s0 = sshll.u32 %s1036_s22, 4  ;;  %s813_s0 = int_to_ptr.vmem [resolvable:$true] %s812_s0 }
  0x1f   :  { %v34_v60 = vld [vmem:[%s1649_s1 + $0x8] sm:$0xff]  ;;  %852 = vmatpush3.msra.mxu0 %v35_v54  ;;  %887 = vmatpush3.msra.mxu1 %v67_v55  ;;  %v1287_v2 = vcombine.high %v1264_v59, %v1264_v59  ;;  %v65_v3 = vld [vmem:[%s1649_s1 + $0x100] sm:$0xff]  ;;  %v264_v16 = vld [vmem:[%s1651_s3 + $0x30] sm:$0xff]  ;;  %s1012_s23 = scalar_lea.vmem %s813_s0, 64  ;;  %p1017_p1 = scmp.lt.s32.totalorder %s813_s0, %s813_s0 }
  0x20   :  { %v66_v61 = vld [vmem:[%s1649_s1 + $0x108] sm:$0xff]  ;;  %853 = vmatprep.subr.mxu0 %v50_v57  ;;  %888 = vmatprep.subr.mxu1 %v82_v58  ;;  %v820_v6 = vld [vmem:[%s1650_s2] ss:$0 sm:$0xff]  ;;  %v261_v19 = vld [vmem:[%s1651_s3 + $0x18] sm:$0xff]  ;;  %p1013_p0 = scmp.ne.s32.totalorder %s813_s0, %s1012_s23  ;;  %p1018_p2 = scmp.lt.s32.totalorder %s1012_s23, %s1012_s23 }
  0x21   :  { %854 = vmatpush3.msra.mxu0 %v34_v60  ;;  %889 = vmatpush3.msra.mxu1 %v66_v61  ;;  %v263_v17 = vld [vmem:[%s1651_s3 + $0x28] sm:$0xff]  ;;  %v262_v18 = vld [vmem:[%s1651_s3 + $0x20] sm:$0xff]  ;;  %v260_v20 = vld [vmem:[%s1651_s3 + $0x10] sm:$0xff] }
  0x22   :  { %855 = vmatprep.subr.mxu0 %v49_v62  ;;  %890 = vmatprep.subr.mxu1 %v81_v63  ;;  %v259_v21 = vld [vmem:[%s1651_s3 + $0x8] sm:$0xff]  ;;  %v258_v22 = vld [vmem:[%s1651_s3] sm:$0xff]  ;;  %v449_v31 = vld [vmem:[%s1653_s5 + $0xf8] sm:$0xff]  ;;  %p1019_p3 = por %p1018_p2, %p1017_p1 }
  0x23   :  { %856 = vmatpush3.msra.mxu0 %v33_v1  ;;  %174 = vmatprep.mubr.f32.mxu0 %v1280_v0  ;;  %v342_v28 = vld [vmem:[%s1652_s4 + $0x8] sm:$0xff]  ;;  %v341_v29 = vld [vmem:[%s1652_s4] sm:$0xff]  ;;  %v448_v32 = vld [vmem:[%s1653_s5 + $0xf0] sm:$0xff] }
  0x24   :  { %891 = vmatpush3.msra.mxu1 %v65_v3  ;;  %244 = vmatprep.mubr.f32.mxu1 %v1287_v2  ;;  %v447_v30 = vld [vmem:[%s1653_s5 + $0xe8] sm:$0xff]  ;;  %v445_v33 = vld [vmem:[%s1653_s5 + $0xd8] sm:$0xff]  ;;  %v444_v34 = vld [vmem:[%s1653_s5 + $0xd0] sm:$0xff]  ;;  %p1020_p4 = pnand %p1019_p3, %p1013_p0 }
  0x25   :  { %175 = vmatmul.mubr.f32.vlgmr.msra.gmra.mxu0 %v1253_v56  ;;  %245 = vmatmul.mubr.f32.vlgmr.msra.gmra.mxu1 %v1264_v59  ;;  %v441_v35 = vld [vmem:[%s1653_s5 + $0xb8] sm:$0xff]  ;;  %v440_v36 = vld [vmem:[%s1653_s5 + $0xb0] sm:$0xff]  ;;  %v446_v46 = vld [vmem:[%s1653_s5 + $0xe0] sm:$0xff] }
  0x26   :  { %977 = vmatprep.subr.mxu0 %v1034_v14  ;;  %996 = vmatprep.subr.mxu1 %v1034_v14  ;;  %v437_v37 = vld [vmem:[%s1653_s5 + $0x98] sm:$0xff]  ;;  %v436_v38 = vld [vmem:[%s1653_s5 + $0x90] sm:$0xff]  ;;  %v443_v48 = vld [vmem:[%s1653_s5 + $0xc8] sm:$0xff] }
  0x27   :  { %978 = vmatpush3.msra.mxu0 %v265_v15  ;;  %993 = vmatprep.mubr.msk.f32.mxu0 %vm1035_vm1, %v1034_v14  ;;  %v433_v39 = vld [vmem:[%s1653_s5 + $0x78] sm:$0xff]  ;;  %v432_v40 = vld [vmem:[%s1653_s5 + $0x70] sm:$0xff]  ;;  %v442_v49 = vld [vmem:[%s1653_s5 + $0xc0] sm:$0xff] }
  0x28   :  { %979 = vmatprep.subr.mxu0 %v1034_v14  ;;  %1000 = vmatprep.mubr.msk.f32.mxu1 %vm1035_vm1, %v1034_v14  ;;  %v429_v41 = vld [vmem:[%s1653_s5 + $0x58] sm:$0xff]  ;;  %v428_v42 = vld [vmem:[%s1653_s5 + $0x50] sm:$0xff]  ;;  %v439_v50 = vld [vmem:[%s1653_s5 + $0xa8] sm:$0xff] }
  0x29   :  { %980 = vmatpush3.msra.mxu0 %v264_v16  ;;  %997 = vmatpush3.msra.mxu1 %v342_v28  ;;  %v425_v43 = vld [vmem:[%s1653_s5 + $0x38] sm:$0xff]  ;;  %v438_v51 = vld [vmem:[%s1653_s5 + $0xa0] sm:$0xff]  ;;  %v435_v52 = vld [vmem:[%s1653_s5 + $0x88] sm:$0xff] }
  0x2a   :  { %981 = vmatprep.subr.mxu0 %v1034_v14  ;;  %998 = vmatprep.subr.mxu1 %v1034_v14  ;;  %v434_v53 = vld [vmem:[%s1653_s5 + $0x80] sm:$0xff]  ;;  %v431_v54 = vld [vmem:[%s1653_s5 + $0x68] sm:$0xff]  ;;  %v424_v62 = vld [vmem:[%s1653_s5 + $0x30] sm:$0xff] }
  0x2b   :  { %982 = vmatpush3.msra.mxu0 %v263_v17  ;;  %999 = vmatpush3.msra.mxu1 %v341_v29  ;;  %v430_v55 = vld [vmem:[%s1653_s5 + $0x60] sm:$0xff]  ;;  %v427_v57 = vld [vmem:[%s1653_s5 + $0x48] sm:$0xff]  ;;  %v421_v1 = vld [vmem:[%s1653_s5 + $0x18] sm:$0xff] }
  0x2c   :  { %983 = vmatprep.subr.mxu0 %v1034_v14  ;;  %469 = vmatprep.subr.mxu1 %v447_v30  ;;  %v426_v58 = vld [vmem:[%s1653_s5 + $0x40] sm:$0xff]  ;;  %v423_v60 = vld [vmem:[%s1653_s5 + $0x28] sm:$0xff]  ;;  %v645_v15 = vld [vmem:[%s1654_s6 + $0x170] sm:$0xff] }
  0x2d   :  { %984 = vmatpush3.msra.mxu0 %v262_v18  ;;  %v422_v61 = vld [vmem:[%s1653_s5 + $0x20] sm:$0xff]  ;;  %v419_v63 = vld [vmem:[%s1653_s5 + $0x8] sm:$0xff]  ;;  %v625_v28 = vld [vmem:[%s1654_s6 + $0xd0] sm:$0xff] }
  0x2e   :  { %985 = vmatprep.subr.mxu0 %v1034_v14  ;;  %v418_v3 = vld [vmem:[%s1653_s5] sm:$0xff]  ;;  %v628_v16 = vld [vmem:[%s1654_s6 + $0xe8] sm:$0xff]  ;;  %v657_v29 = vld [vmem:[%s1654_s6 + $0x1d0] sm:$0xff] }
  0x2f   :  { %986 = vmatpush3.msra.mxu0 %v261_v19  ;;  %v660_v17 = vld [vmem:[%s1654_s6 + $0x1e8] sm:$0xff]  ;;  %v609_v30 = vld [vmem:[%s1654_s6 + $0x50] sm:$0xff] }
  0x30   :  { %987 = vmatprep.subr.mxu0 %v1034_v14  ;;  %v612_v18 = vld [vmem:[%s1654_s6 + $0x68] sm:$0xff] }
  0x31   :  { %988 = vmatpush3.msra.mxu0 %v260_v20  ;;  %v644_v19 = vld [vmem:[%s1654_s6 + $0x168] sm:$0xff]  ;;  %v627_v20 = vld [vmem:[%s1654_s6 + $0xe0] sm:$0xff] }
  0x32   :  { %989 = vmatprep.subr.mxu0 %v1034_v14 }
  0x33   :  { %990 = vmatpush3.msra.mxu0 %v259_v21  ;;  %v659_v21 = vld [vmem:[%s1654_s6 + $0x1e0] sm:$0xff] }
  0x34   :  { %991 = vmatprep.subr.mxu0 %v1034_v14 }
  0x35   :  { %992 = vmatpush3.msra.mxu0 %v258_v22  ;;  %v611_v22 = vld [vmem:[%s1654_s6 + $0x60] sm:$0xff] }
  0x36   :  { %540 = vmatprep.subr.mxu0 %v449_v31  ;;  %v641_v31 = vld [vmem:[%s1654_s6 + $0x150] sm:$0xff] }
  0xe5   :  { %v857_v4 = vpop.f32.mrf.mxu0  ;;  %v892_v5 = vpop.f32.mrf.mxu1 }
  0xe7   :  { %v858_v7 = vpop.f32.mrf.mxu0  ;;  %v893_v8 = vpop.f32.mrf.mxu1 }
  0xe8   :  { %v859_v9 = vadd.f32 %v858_v7, %v857_v4  ;;  %v894_v11 = vadd.f32 %v893_v8, %v892_v5  ;;  %v420_v4 = vld [vmem:[%s1653_s5 + $0x10] sm:$0xff]  ;;  %v630_v5 = vld [vmem:[%s1654_s6 + $0xf8] sm:$0xff] }
  0xea   :  { %v177_v10 = vadd.f32 %v859_v9, %v820_v6  ;;  %v662_v6 = vld [vmem:[%s1654_s6 + $0x1f8] sm:$0xff] }
  0xeb   :  { %v614_v9 = vld [vmem:[%s1654_s6 + $0x78] sm:$0xff] }
  0xec   :  { %v247_v12 = vadd.f32 %v894_v11, %v177_v10  ;;  %v646_v10 = vld [vmem:[%s1654_s6 + $0x178] sm:$0xff] }
  0xee   :  { %v251_v13 = vsel %vm250_vm0, %v247_v12, -inf }
  0xef   :  { %252 = vmax.xlane.f32.xlu0 %v251_v13  ;;  %v661_v13 = vld [vmem:[%s1654_s6 + $0x1f0] sm:$0xff] }
 0x178   :  { %v253_v23 = vpop.xlane.xlu0 %252 }
 0x179   :  { %v254_v24 = vsub.f32 %v247_v12, %v253_v23  ;;  %v629_v12 = vld [vmem:[%s1654_s6 + $0xf0] sm:$0xff]  ;;  %v643_v23 = vld [vmem:[%s1654_s6 + $0x160] sm:$0xff] }
 0x17b   :  { %v255_v25 = vmax.f32 %v254_v24, -60.0  ;;  %v626_v24 = vld [vmem:[%s1654_s6 + $0xd8] sm:$0xff] }
 0x17d   :  { %v256_v26 = vmul.f32 1.442695, %v255_v25  ;;  %v658_v25 = vld [vmem:[%s1654_s6 + $0x1d8] sm:$0xff] }
 0x17f   :  { %1008 = vpow2.f32 %v256_v26  ;;  %v610_v26 = vld [vmem:[%s1654_s6 + $0x58] sm:$0xff] }
 0x18c   :  { %v1334_v27 = vpop.eup %1008 }
 0x18d   :  { %994 = vmatmul.mubr.msk.f32.vlgmr.msra.gmra.mxu0 %vm266_vm2, %v1334_v27 }
 0x18e   :  { %588 = vmatprep.mubr.f32.mxu0 %v1034_v14  ;;  %541 = vmatpush1.msra.mxu0 %v448_v32  ;;  %v624_v32 = vld [vmem:[%s1654_s6 + $0xc8] sm:$0xff] }
 0x18f   :  { %542 = vmatprep.subr.mxu0 %v445_v33  ;;  %v656_v33 = vld [vmem:[%s1654_s6 + $0x1c8] sm:$0xff] }
 0x190   :  { %543 = vmatpush1.msra.mxu0 %v444_v34  ;;  %v608_v34 = vld [vmem:[%s1654_s6 + $0x48] sm:$0xff] }
 0x191   :  { %544 = vmatprep.subr.mxu0 %v441_v35  ;;  %v640_v35 = vld [vmem:[%s1654_s6 + $0x148] sm:$0xff] }
 0x192   :  { %545 = vmatpush1.msra.mxu0 %v440_v36  ;;  %v623_v36 = vld [vmem:[%s1654_s6 + $0xc0] sm:$0xff] }
 0x193   :  { %546 = vmatprep.subr.mxu0 %v437_v37  ;;  %v655_v37 = vld [vmem:[%s1654_s6 + $0x1c0] sm:$0xff] }
 0x194   :  { %547 = vmatpush1.msra.mxu0 %v436_v38  ;;  %v607_v38 = vld [vmem:[%s1654_s6 + $0x40] sm:$0xff] }
 0x195   :  { %548 = vmatprep.subr.mxu0 %v433_v39  ;;  %v639_v39 = vld [vmem:[%s1654_s6 + $0x140] sm:$0xff] }
 0x196   :  { %549 = vmatpush1.msra.mxu0 %v432_v40  ;;  %v622_v40 = vld [vmem:[%s1654_s6 + $0xb8] sm:$0xff] }
 0x197   :  { %550 = vmatprep.subr.mxu0 %v429_v41  ;;  %v654_v41 = vld [vmem:[%s1654_s6 + $0x1b8] sm:$0xff] }
 0x198   :  { %551 = vmatpush1.msra.mxu0 %v428_v42  ;;  %v606_v42 = vld [vmem:[%s1654_s6 + $0x38] sm:$0xff] }
 0x199   :  { %552 = vmatprep.subr.mxu0 %v425_v43  ;;  %v638_v43 = vld [vmem:[%s1654_s6 + $0x138] sm:$0xff] }
 0x19a   :  { %553 = vmatpush1.msra.mxu0 %v424_v62  ;;  %v617_v62 = vld [vmem:[%s1654_s6 + $0x90] sm:$0xff] }
 0x19b   :  { %554 = vmatprep.subr.mxu0 %v421_v1  ;;  %v601_v1 = vld [vmem:[%s1654_s6 + $0x10] sm:$0xff] }
 0x19c   :  { %555 = vmatpush1.msra.mxu0 %v420_v4  ;;  %v616_v4 = vld [vmem:[%s1654_s6 + $0x88] sm:$0xff] }
 0x19d   :  { %942 = vmatprep.subr.mxu0 %v662_v6  ;;  %v600_v6 = vld [vmem:[%s1654_s6 + $0x8] sm:$0xff] }
 0x24d   :  { %v336_v44 = vpop.f32.mrf.mxu0 }
 0x24e   :  { %1010 = vrcp.f32 %v336_v44  ;;  %v621_v44 = vld [vmem:[%s1654_s6 + $0xb0] sm:$0xff] }
 0x24f   :  { %v995_v45 = vpop.f32.mrf.mxu0 }
 0x250   :  { %v653_v45 = vld [vmem:[%s1654_s6 + $0x1b0] sm:$0xff] }
 0x25b   :  { %v1011_v47 = vpop.eup %1010 }
 0x25c   :  { %1001 = vmatmul.mubr.msk.f32.vlgmr.msra.gmra.mxu1 %vm343_vm3, %v1011_v47  ;;  %v637_v47 = vld [vmem:[%s1654_s6 + $0x130] sm:$0xff] }
 0x25d   :  { %470 = vmatpush1.msra.mxu1 %v446_v46  ;;  %517 = vmatprep.mubr.f32.mxu1 %v1034_v14  ;;  %v613_v14 = vld [vmem:[%s1654_s6 + $0x70] sm:$0xff] }
 0x25e   :  { %471 = vmatprep.subr.mxu1 %v443_v48  ;;  %v605_v46 = vld [vmem:[%s1654_s6 + $0x30] sm:$0xff]  ;;  %v620_v48 = vld [vmem:[%s1654_s6 + $0xa8] sm:$0xff] }
 0x25f   :  { %472 = vmatpush1.msra.mxu1 %v442_v49  ;;  %v652_v49 = vld [vmem:[%s1654_s6 + $0x1a8] sm:$0xff] }
 0x260   :  { %473 = vmatprep.subr.mxu1 %v439_v50  ;;  %v604_v50 = vld [vmem:[%s1654_s6 + $0x28] sm:$0xff] }
 0x261   :  { %474 = vmatpush1.msra.mxu1 %v438_v51  ;;  %v636_v51 = vld [vmem:[%s1654_s6 + $0x128] sm:$0xff] }
 0x262   :  { %475 = vmatprep.subr.mxu1 %v435_v52  ;;  %v619_v52 = vld [vmem:[%s1654_s6 + $0xa0] sm:$0xff] }
 0x263   :  { %476 = vmatpush1.msra.mxu1 %v434_v53  ;;  %v651_v53 = vld [vmem:[%s1654_s6 + $0x1a0] sm:$0xff] }
 0x264   :  { %477 = vmatprep.subr.mxu1 %v431_v54  ;;  %v603_v54 = vld [vmem:[%s1654_s6 + $0x20] sm:$0xff] }
 0x265   :  { %478 = vmatpush1.msra.mxu1 %v430_v55  ;;  %v635_v55 = vld [vmem:[%s1654_s6 + $0x120] sm:$0xff] }
 0x266   :  { %479 = vmatprep.subr.mxu1 %v427_v57  ;;  %v618_v57 = vld [vmem:[%s1654_s6 + $0x98] sm:$0xff] }
 0x267   :  { %480 = vmatpush1.msra.mxu1 %v426_v58  ;;  %v650_v58 = vld [vmem:[%s1654_s6 + $0x198] sm:$0xff] }
 0x268   :  { %481 = vmatprep.subr.mxu1 %v423_v60  ;;  %v602_v60 = vld [vmem:[%s1654_s6 + $0x18] sm:$0xff] }
 0x269   :  { %482 = vmatpush1.msra.mxu1 %v422_v61  ;;  %v634_v61 = vld [vmem:[%s1654_s6 + $0x118] sm:$0xff] }
 0x26a   :  { %483 = vmatprep.subr.mxu1 %v419_v63  ;;  %v649_v63 = vld [vmem:[%s1654_s6 + $0x190] sm:$0xff] }
 0x26b   :  { %484 = vmatpush1.msra.mxu1 %v418_v3  ;;  %v633_v3 = vld [vmem:[%s1654_s6 + $0x110] sm:$0xff] }
 0x26c   :  { %907 = vmatprep.subr.mxu1 %v630_v5  ;;  %v648_v5 = vld [vmem:[%s1654_s6 + $0x188] sm:$0xff] }
 0x31c   :  { %v413_v7 = vpop.f32.mrf.mxu1 }
 0x31d   :  { %v417_v8 = vmul.f32 %v1334_v27, %v413_v7  ;;  %v642_v27 = vld [vmem:[%s1654_s6 + $0x158] sm:$0xff]  ;;  %v632_v7 = vld [vmem:[%s1654_s6 + $0x108] sm:$0xff] }
 0x31e   :  { %v1002_v11 = vpop.f32.mrf.mxu1 }
 0x31f   :  { %823 = vmatmul.mubr.msk.f32.vlgmr.msra.gmra.mxu1 %vm266_vm2, %v417_v8  ;;  %824 = vmatmul.mubr.msk.f32.vlgmr.msra.gmra.mxu0 %vm266_vm2, %v417_v8  ;;  %v615_v8 = vld [vmem:[%s1654_s6 + $0x80] sm:$0xff] }
 0x320   :  { %908 = vmatpush3.msra.mxu1 %v614_v9  ;;  %943 = vmatpush3.msra.mxu0 %v646_v10  ;;  %v647_v9 = vld [vmem:[%s1654_s6 + $0x180] sm:$0xff] }
 0x321   :  { %909 = vmatprep.subr.mxu1 %v629_v12  ;;  %944 = vmatprep.subr.mxu0 %v661_v13  ;;  %v599_v10 = vld [vmem:[%s1654_s6] sm:$0xff] }
 0x322   :  { %910 = vmatpush3.msra.mxu1 %v613_v14  ;;  %945 = vmatpush3.msra.mxu0 %v645_v15  ;;  %v631_v11 = vld [vmem:[%s1654_s6 + $0x100] sm:$0xff] }
 0x323   :  { %911 = vmatprep.subr.mxu1 %v628_v16  ;;  %946 = vmatprep.subr.mxu0 %v660_v17 }
 0x324   :  { %912 = vmatpush3.msra.mxu1 %v612_v18  ;;  %947 = vmatpush3.msra.mxu0 %v644_v19 }
 0x325   :  { %913 = vmatprep.subr.mxu1 %v627_v20  ;;  %948 = vmatprep.subr.mxu0 %v659_v21 }
 0x326   :  { %914 = vmatpush3.msra.mxu1 %v611_v22  ;;  %949 = vmatpush3.msra.mxu0 %v643_v23  ;;  %v664_v22 = vstv %s1655_s7 }
 0x327   :  { %915 = vmatprep.subr.mxu1 %v626_v24  ;;  %950 = vmatprep.subr.mxu0 %v658_v25 }
 0x328   :  { %916 = vmatpush3.msra.mxu1 %v610_v26  ;;  %951 = vmatpush3.msra.mxu0 %v642_v27 }
 0x329   :  { %917 = vmatprep.subr.mxu1 %v625_v28  ;;  %952 = vmatprep.subr.mxu0 %v657_v29 }
 0x32a   :  { %918 = vmatpush3.msra.mxu1 %v609_v30  ;;  %953 = vmatpush3.msra.mxu0 %v641_v31 }
 0x32b   :  { %919 = vmatprep.subr.mxu1 %v624_v32  ;;  %954 = vmatprep.subr.mxu0 %v656_v33 }
 0x32c   :  { %920 = vmatpush3.msra.mxu1 %v608_v34  ;;  %955 = vmatpush3.msra.mxu0 %v640_v35 }
 0x32d   :  { %921 = vmatprep.subr.mxu1 %v623_v36  ;;  %956 = vmatprep.subr.mxu0 %v655_v37 }
 0x32e   :  { %922 = vmatpush3.msra.mxu1 %v607_v38  ;;  %957 = vmatpush3.msra.mxu0 %v639_v39 }
 0x32f   :  { %923 = vmatprep.subr.mxu1 %v622_v40  ;;  %958 = vmatprep.subr.mxu0 %v654_v41 }
 0x330   :  { %924 = vmatpush3.msra.mxu1 %v606_v42  ;;  %959 = vmatpush3.msra.mxu0 %v638_v43 }
 0x331   :  { %925 = vmatprep.subr.mxu1 %v621_v44  ;;  %960 = vmatprep.subr.mxu0 %v653_v45 }
 0x332   :  { %926 = vmatpush3.msra.mxu1 %v605_v46  ;;  %961 = vmatpush3.msra.mxu0 %v637_v47 }
 0x333   :  { %927 = vmatprep.subr.mxu1 %v620_v48  ;;  %962 = vmatprep.subr.mxu0 %v652_v49 }
 0x334   :  { %928 = vmatpush3.msra.mxu1 %v604_v50  ;;  %963 = vmatpush3.msra.mxu0 %v636_v51 }
 0x335   :  { %929 = vmatprep.subr.mxu1 %v619_v52  ;;  %964 = vmatprep.subr.mxu0 %v651_v53 }
 0x336   :  { %930 = vmatpush3.msra.mxu1 %v603_v54  ;;  %965 = vmatpush3.msra.mxu0 %v635_v55 }
 0x337   :  { %931 = vmatprep.subr.mxu1 %v618_v57  ;;  %966 = vmatprep.subr.mxu0 %v650_v58 }
 0x338   :  { %932 = vmatpush3.msra.mxu1 %v602_v60  ;;  %967 = vmatpush3.msra.mxu0 %v634_v61 }
 0x339   :  { %933 = vmatprep.subr.mxu1 %v617_v62  ;;  %968 = vmatprep.subr.mxu0 %v649_v63 }
 0x33a   :  { %934 = vmatpush3.msra.mxu1 %v601_v1  ;;  %969 = vmatpush3.msra.mxu0 %v633_v3 }
 0x33b   :  { %935 = vmatprep.subr.mxu1 %v616_v4  ;;  %970 = vmatprep.subr.mxu0 %v648_v5 }
 0x33c   :  { %936 = vmatpush3.msra.mxu1 %v600_v6  ;;  %971 = vmatpush3.msra.mxu0 %v632_v7 }
 0x33d   :  { %937 = vmatprep.subr.mxu1 %v615_v8  ;;  %972 = vmatprep.subr.mxu0 %v647_v9 }
 0x33e   :  { %938 = vmatpush3.msra.mxu1 %v599_v10  ;;  %973 = vmatpush3.msra.mxu0 %v631_v11 }
 0x3df   :  { %v519_v12 = vpop.f32.mrf.mxu1  ;;  %v590_v13 = vpop.f32.mrf.mxu0 }
 0x3e0   :  { %v595_v18 = vmul.f32 %v519_v12, %v1253_v56  ;;  %v597_v19 = vmul.f32 %v590_v13, %v1264_v59 }
 0x3e1   :  { %v521_v14 = vpop.f32.mrf.mxu1  ;;  %v592_v15 = vpop.f32.mrf.mxu0 }
 0x3e2   :  { %v596_v16 = vmul.f32 %v521_v14, %v1280_v0  ;;  %v598_v17 = vmul.f32 %v592_v15, %v1287_v2 }
 0x3e4   :  { %729 = vmatprep.mubr.f32.mxu1 %v596_v16  ;;  %799 = vmatprep.mubr.f32.mxu0 %v598_v17 }
 0x3e5   :  { %730 = vmatmul.mubr.f32.vlgmr.msra.gmra.mxu1 %v595_v18  ;;  %800 = vmatmul.mubr.f32.vlgmr.msra.gmra.mxu0 %v597_v19 }
 0x4a5   :  { %v939_v20 = vpop.f32.mrf.mxu1  ;;  %v974_v21 = vpop.f32.mrf.mxu0 }
 0x4a7   :  { %v940_v23 = vpop.f32.mrf.mxu1  ;;  %v975_v24 = vpop.f32.mrf.mxu0 }
 0x4a8   :  { %v941_v25 = vadd.f32 %v940_v23, %v939_v20  ;;  %v976_v2 = vadd.f32 %v975_v24, %v974_v21 }
 0x4aa   :  { %v732_v0 = vadd.f32 %v941_v25, %v664_v22 }
 0x4ac   :  { %v802_v56 = vadd.f32 %v976_v2, %v732_v0 }
 0x4ae   :  { %805 = vst [vmem:[#allocation3] sm:$0xf] %v802_v56 }
 0x4af   :  { %1023 = shalt.err (!%p1020_p4)
}
 0x4b0   :  { %815 = dma.vmem_to_hbm [thread:$0]  %s813_s0, 64, %s1656_s8, [#allocation4]  }
 0x4b1   :  { %1032 = dma.done.wait [#allocation4], 64  }
 0x4b2   :  { %1033 = vsyncadd [#allocation4], 4294967232 }
 0x4b3   :  { %819 = vsyncpa [#allocation4], 1 }

</bundles_post_ra>
